<compile_context>
chip_gen: v5e
topology: v5e:2x2
jax: 0.10.0
libtpu: 0.0.40
codegen_flags: <defaults>
</compile_context>

<pallas_src>
import jax
import jax.numpy as jnp
from jax.experimental import pallas as pl
from jax.experimental.pallas import tpu as pltpu


def _round_up(x, m):
    return (x + m - 1) // m * m


def _mlp_kernel(x_ref, w1_ref, b1_ref, w2_ref, b2_ref, o_ref):
    # Hot path: two MXU matmuls + VPU bias-add/ReLU, fully fused in VMEM.
    x = x_ref[...]
    h = jnp.dot(x, w1_ref[...], preferred_element_type=jnp.float32) + b1_ref[...]
    h = jnp.maximum(h, 0.0)
    y = jnp.dot(h.astype(w2_ref.dtype), w2_ref[...],
                preferred_element_type=jnp.float32) + b2_ref[...]
    o_ref[...] = y.astype(o_ref.dtype)


def group_embedding_forward(x, w1, b1, w2, b2, *, block_b=512):
    """Fused MLP forward: relu(x @ w1 + b1) @ w2 + b2.

    x  : (B, group_dim)
    w1 : (group_dim, hidden_dim)    b1 : (1, hidden_dim)
    w2 : (hidden_dim, out_put_dim)  b2 : (1, out_put_dim)
    returns (B, out_put_dim)
    """
    B, G = x.shape
    H = w1.shape[1]
    O = w2.shape[1]
    dtype = x.dtype
    itemsize = jnp.dtype(dtype).itemsize

    # Lane-dense padding for hidden / output feature dims (multiples of 128).
    Hp = _round_up(H, 128)
    Op = _round_up(O, 128)

    # Batch tile: multiple of 8 sublanes, capped so x/out double buffers stay
    # small in VMEM; batch padded up to a whole number of tiles.
    TB = min(_round_up(block_b, 8), _round_up(B, 8))
    Bp = _round_up(B, TB)
    nb = pl.cdiv(Bp, TB)

    # Zero-padding keeps the math exact: padded hidden columns give relu(0)=0,
    # padded W2 rows contribute 0, padded output columns / batch rows are
    # sliced off below.
    xp = x if Bp == B else jnp.pad(x, ((0, Bp - B), (0, 0)))
    w1p = jnp.pad(w1, ((0, 0), (0, Hp - H))) if Hp != H else w1
    b1p = jnp.pad(b1, ((0, 0), (0, Hp - H))) if Hp != H else b1
    w2p = (jnp.pad(w2, ((0, Hp - H), (0, Op - O)))
           if (Hp != H or Op != O) else w2)
    b2p = jnp.pad(b2, ((0, 0), (0, Op - O))) if Op != O else b2

    cost = pl.CostEstimate(
        flops=2 * Bp * (G * Hp + Hp * Op),
        transcendentals=0,
        bytes_accessed=(Bp * G + Bp * Op + G * Hp + Hp + Hp * Op + Op) * itemsize,
    )

    out = pl.pallas_call(
        _mlp_kernel,
        out_shape=jax.ShapeDtypeStruct((Bp, Op), dtype),
        grid=(nb,),
        in_specs=[
            pl.BlockSpec((TB, G), lambda i: (i, 0)),   # x: pipelined per batch tile
            pl.BlockSpec((G, Hp), lambda i: (0, 0)),   # W1: resident
            pl.BlockSpec((1, Hp), lambda i: (0, 0)),   # b1: resident
            pl.BlockSpec((Hp, Op), lambda i: (0, 0)),  # W2: resident
            pl.BlockSpec((1, Op), lambda i: (0, 0)),   # b2: resident
        ],
        out_specs=pl.BlockSpec((TB, Op), lambda i: (i, 0)),
        compiler_params=pltpu.CompilerParams(
            dimension_semantics=("parallel",)),        # independent batch tiles
        cost_estimate=cost,
    )(xp, w1p, b1p, w2p, b2p)

    return out[:B, :O]


def init_params(key, group_dim, hidden_dim, out_put_dim, dtype=jnp.float32):
    """Deterministic init matching nn.Linear's U(-1/sqrt(fan_in), 1/sqrt(fan_in))."""
    k1, k2, k3, k4 = jax.random.split(key, 4)
    bound1 = 1.0 / (group_dim ** 0.5)
    bound2 = 1.0 / (hidden_dim ** 0.5)
    # stored as (in, out) — i.e. the transpose of PyTorch's (out, in) weight
    w1 = jax.random.uniform(k1, (group_dim, hidden_dim), dtype, -bound1, bound1)
    b1 = jax.random.uniform(k2, (1, hidden_dim), dtype, -bound1, bound1)
    w2 = jax.random.uniform(k3, (hidden_dim, out_put_dim), dtype, -bound2, bound2)
    b2 = jax.random.uniform(k4, (1, out_put_dim), dtype, -bound2, bound2)
    return w1, b1, w2, b2


if __name__ == "__main__":
    key = jax.random.PRNGKey(0)
    kx, kp = jax.random.split(key)

    # Small shapes consistent with the module's forward. B is deliberately not
    # a multiple of the batch tile so padding + multi-step pipelining is exercised.
    B, group_dim, hidden_dim, out_put_dim = 20, 16, 32, 8

    x = jax.random.normal(kx, (B, group_dim), dtype=jnp.float32)
    w1, b1, w2, b2 = init_params(kp, group_dim, hidden_dim, out_put_dim)

    # Small block_b here to force a multi-step grid; default (512) is used in practice.
    out = group_embedding_forward(x, w1, b1, w2, b2, block_b=8)
    out = jax.block_until_ready(out)

    # pure-JAX reference check
    ref = jnp.maximum(x @ w1 + b1, 0.0) @ w2 + b2
    assert out.shape == (B, out_put_dim)
    assert jnp.allclose(out, ref, atol=1e-5, rtol=1e-5)

    # Also check the default (single-tile for this tiny B) path.
    out2 = jax.block_until_ready(group_embedding_forward(x, w1, b1, w2, b2))
    assert jnp.allclose(out2, ref, atol=1e-5, rtol=1e-5)

    print("KERNEL_OK")
</pallas_src>

<mosaic_0001>
module attributes {stable_mosaic.version = 11 : i64} {
  func.func @_mlp_kernel(%arg0: i32, %arg1: memref<8x16xf32, #tpu.memory_space<vmem>>, %arg2: memref<16x128xf32, #tpu.memory_space<vmem>>, %arg3: memref<1x128xf32, #tpu.memory_space<vmem>>, %arg4: memref<128x128xf32, #tpu.memory_space<vmem>>, %arg5: memref<1x128xf32, #tpu.memory_space<vmem>>, %arg6: memref<8x128xf32, #tpu.memory_space<vmem>>) attributes {dimension_semantics = [#tpu.dimension_semantics<parallel>], iteration_bounds = array<i64: 3>, scalar_prefetch = 0 : i64, scratch_operands = 0 : i64, tpu.core_type = #tpu.core_type<tc>, window_params = [{transform_indices = @transform_0, window_bounds = array<i64: 8, 16>}, {pipeline_mode = #tpu.pipeline_mode<synchronous>, transform_indices = @transform_1, window_bounds = array<i64: 16, 128>}, {pipeline_mode = #tpu.pipeline_mode<synchronous>, transform_indices = @transform_2, window_bounds = array<i64: 1, 128>}, {pipeline_mode = #tpu.pipeline_mode<synchronous>, transform_indices = @transform_3, window_bounds = array<i64: 128, 128>}, {pipeline_mode = #tpu.pipeline_mode<synchronous>, transform_indices = @transform_4, window_bounds = array<i64: 1, 128>}, {transform_indices = @transform_5, window_bounds = array<i64: 8, 128>}]} {
    %c0 = arith.constant 0 : index
    %c0_0 = arith.constant 0 : index
    %0 = vector.load %arg1[%c0, %c0_0] : memref<8x16xf32, #tpu.memory_space<vmem>>, vector<8x16xf32>
    %c0_1 = arith.constant 0 : index
    %c0_2 = arith.constant 0 : index
    %1 = vector.load %arg2[%c0_1, %c0_2] : memref<16x128xf32, #tpu.memory_space<vmem>>, vector<16x128xf32>
    %cst = arith.constant dense<0.000000e+00> : vector<8x128xf32>
    %2 = tpu.matmul %0, %1, %cst {dimension_numbers = #tpu.dot_dimension_numbers<[1], [0], [0], [1], [0, 0, 1, 1], [], []>} : vector<8x16xf32>, vector<16x128xf32>, vector<8x128xf32> -> vector<8x128xf32>
    %c0_3 = arith.constant 0 : index
    %c0_4 = arith.constant 0 : index
    %3 = vector.load %arg3[%c0_3, %c0_4] : memref<1x128xf32, #tpu.memory_space<vmem>>, vector<1x128xf32>
    %4 = vector.broadcast %3 : vector<1x128xf32> to vector<8x128xf32>
    %5 = arith.addf %2, %4 : vector<8x128xf32>
    %cst_5 = arith.constant 0.000000e+00 : f32
    %6 = vector.broadcast %cst_5 : f32 to vector<8x128xf32>
    %7 = arith.maximumf %5, %6 : vector<8x128xf32>
    %c0_6 = arith.constant 0 : index
    %c0_7 = arith.constant 0 : index
    %8 = vector.load %arg4[%c0_6, %c0_7] : memref<128x128xf32, #tpu.memory_space<vmem>>, vector<128x128xf32>
    %cst_8 = arith.constant dense<0.000000e+00> : vector<8x128xf32>
    %9 = tpu.matmul %7, %8, %cst_8 {dimension_numbers = #tpu.dot_dimension_numbers<[1], [0], [0], [1], [0, 0, 1, 1], [], []>} : vector<8x128xf32>, vector<128x128xf32>, vector<8x128xf32> -> vector<8x128xf32>
    %c0_9 = arith.constant 0 : index
    %c0_10 = arith.constant 0 : index
    %10 = vector.load %arg5[%c0_9, %c0_10] : memref<1x128xf32, #tpu.memory_space<vmem>>, vector<1x128xf32>
    %11 = vector.broadcast %10 : vector<1x128xf32> to vector<8x128xf32>
    %12 = arith.addf %9, %11 : vector<8x128xf32>
    %c0_11 = arith.constant 0 : index
    %c0_12 = arith.constant 0 : index
    %13 = vector.load %arg6[%c0_11, %c0_12] : memref<8x128xf32, #tpu.memory_space<vmem>>, vector<8x128xf32>
    tpu.vector_store %arg6[%c0_11, %c0_12], %12 {strides = array<i32>} : memref<8x128xf32, #tpu.memory_space<vmem>>, vector<8x128xf32>,
    return
  }
  func.func @transform_0(%arg0: i32) -> (i32, i32) {
    %c0_i32 = arith.constant 0 : i32
    %c0_i32_0 = arith.constant 0 : i32
    return %arg0, %c0_i32 : i32, i32
  }
  func.func @transform_1(%arg0: i32) -> (i32, i32) {
    %c0_i32 = arith.constant 0 : i32
    %c0_i32_0 = arith.constant 0 : i32
    %c0_i32_1 = arith.constant 0 : i32
    return %c0_i32, %c0_i32_0 : i32, i32
  }
  func.func @transform_2(%arg0: i32) -> (i32, i32) {
    %c0_i32 = arith.constant 0 : i32
    %c0_i32_0 = arith.constant 0 : i32
    %c0_i32_1 = arith.constant 0 : i32
    return %c0_i32, %c0_i32_0 : i32, i32
  }
  func.func @transform_3(%arg0: i32) -> (i32, i32) {
    %c0_i32 = arith.constant 0 : i32
    %c0_i32_0 = arith.constant 0 : i32
    %c0_i32_1 = arith.constant 0 : i32
    return %c0_i32, %c0_i32_0 : i32, i32
  }
  func.func @transform_4(%arg0: i32) -> (i32, i32) {
    %c0_i32 = arith.constant 0 : i32
    %c0_i32_0 = arith.constant 0 : i32
    %c0_i32_1 = arith.constant 0 : i32
    return %c0_i32, %c0_i32_0 : i32, i32
  }
  func.func @transform_5(%arg0: i32) -> (i32, i32) {
    %c0_i32 = arith.constant 0 : i32
    %c0_i32_0 = arith.constant 0 : i32
    return %arg0, %c0_i32 : i32, i32
  }
}

</mosaic_0001>

<bundles_post_ra>
// kernel: tpu_custom_call.1
= control target key start
LH: loop header
LB: loop body
LE: loop exit
PB: predicated region body
PF: predicated region fallthrough
CT: control target
= control target key end

     0   :  { %10 = vsyncpa [#allocation3], 0  ;;  %s702_s0 = inlined_call_operand.vmem [shape: f32[24,16], index: 0, kind: input, shape index: {}]   ;;  %s703_s1 = inlined_call_operand.vmem [shape: f32[16,128], index: 1, kind: input, shape index: {}]   ;;  %s704_s2 = inlined_call_operand.vmem [shape: f32[1,128], index: 2, kind: input, shape index: {}]   ;;  %s705_s3 = inlined_call_operand.hbm [shape: f32[128,128], index: 3, kind: input, shape index: {}]   ;;  %s706_s4 = inlined_call_operand.vmem [shape: f32[1,128], index: 4, kind: input, shape index: {}]   ;;  %s707_s5 = inlined_call_operand.hbm [shape: f32[24,128], index: 5, kind: output, shape index: {}]  }
   0x1   :  { %11 = vsyncpa [#allocation4], 0 }
   0x2   :  { %13 = vsyncpa [#allocation4 + $0x1], 0  ;;  %s595_s18 = smov 0   ;;  %s597_s19 = smov 0  }
   0x3   :  { %s599_s20 = smov 0   ;;  %s601_s21 = smov 0  }
   0x4 LB: > { %s616_s22 = sadd.s32 4294967295, %s560_s21   ;;  %s397_s23 = sadd.s32 4294967294, %s560_s21   ;;  %s560_s21 = sphi %s601_s21, %s713_s21   ;;  %s556_s20 = sphi %s599_s20, %s712_s20   ;;  %s552_s19 = sphi %s597_s19, %s711_s19   ;;  %s548_s18 = sphi %s595_s18, %s710_s18  }
   0x5   : > { %s620_s24 = sadd.s32 1, %s560_s21   ;;  %s136_s25 = sadd.s32 1, %s556_s20 }
   0x6   : > { %s133_s26 = ssub.s32 %s560_s21, %s620_s24  ;;  %p146_p0 = scmp.ne.s32.totalorder %s556_s20, %s552_s19 }
   0x7   : > { %p134_p1 = scmp.eq.s32.totalorder %s133_s26, 0  ;;  %p147_p2 = scmp.eq.s32.totalorder %s616_s22, 2 }
   0x8   : > { %p152_p3 = scmp.ne.s32.totalorder %s552_s19, %s548_s18  ;;  %p153_p4 = scmp.eq.s32.totalorder %s397_s23, 2 }
   0x9   : > { %s631_s27 = scalar_select %p134_p1, %s556_s20, %s136_s25  }
   0xa   : > { %p633_p5 = por %p147_p2, %p146_p0  ;;  %p637_p6 = por %p153_p4, %p152_p3 }
   0xb   : > { %p398_p7 = scmp.ge.s32.totalorder %s560_s21, 1  ;;  %p160_p8 = scmp.lt.s32.totalorder %s560_s21, 4 }
   0xc   : > { %p424_p9 = scmp.eq.s32.totalorder %s616_s22, 0  ;;  %s177_s7 = sshll.u32 %s705_s3, 4  ;;  %s178_s7 = int_to_ptr.hbm [resolvable:$true] %s177_s7 }
   0xd   : > { %p161_p10 = pnand %p398_p7, %p160_p8  ;;  %s562_s8 = smov [#allocation2]  }
   0xe   : > { %s179_s9 = sshll.u32 %s562_s8, 4  ;;  %s563_s10 = smov 128   ;;  %s180_s9 = int_to_ptr.vmem [resolvable:$true] %s179_s9 }
   0xf   : > { %p416_p11 = pneg %p161_p10  ;;  %s564_s11 = smov 8  }
  0x10   : > { %205 = sbr.rel (%p161_p10) target bundleno = 290 (0x122), region = 40 }
  0x11   : > { %p417_p12 = pnand %p424_p9, %p416_p11 }
  0x13   : > { %419 = dma.hbm_to_vmem [thread:$0]  (!%p417_p12), %s178_s7, 2048, %s180_s9, [#allocation3], %s563_s10, %s563_s10, %s564_s11  }
  0x15   : > { %539 = dma.done.wait (%p424_p9), [#allocation3], 2048  }
  0x16   : > { %541 = vsyncadd (%p424_p9), [#allocation3], 4294965248  ;;  %p233_p13 = scmp.lt.s32.totalorder %s616_s22, 2  ;;  %v239_v0 = vld [vmem:[%s703_s1 + $0x8] sm:$0xff]  ;;  %v238_v1 = vld [vmem:[%s703_s1] sm:$0xff]  ;;  %vm244_vm0 = vcmask 130048  }
  0x17   : > { %262 = vmatpush.msra.mxu0 %v239_v0  ;;  %v284_v3 = vld [vmem:[#allocation2 + $0x78] sm:$0xff]  ;;  %v283_v4 = vld [vmem:[#allocation2 + $0x70] sm:$0xff]  ;;  %v282_v5 = vld [vmem:[#allocation2 + $0x68] sm:$0xff]  ;;  %s230_s7 = sand.u32 1, %s552_s19   ;;  %s407_s9 = sshll.u32 %s616_s22, 3 }
  0x18   : > { %s234_s12 = scalar_select %p233_p13, %s616_s22, 2  ;;  %289 = vmatpush.msra.mxu1 %v284_v3  ;;  %v281_v6 = vld [vmem:[#allocation2 + $0x60] sm:$0xff]  ;;  %v280_v7 = vld [vmem:[#allocation2 + $0x58] sm:$0xff]  ;;  %v279_v8 = vld [vmem:[#allocation2 + $0x50] sm:$0xff] }
  0x19   : > { %263 = vmatpush.msra.mxu0 %v238_v1  ;;  %v278_v9 = vld [vmem:[#allocation2 + $0x48] sm:$0xff]  ;;  %v277_v10 = vld [vmem:[#allocation2 + $0x40] sm:$0xff]  ;;  %v276_v11 = vld [vmem:[#allocation2 + $0x38] sm:$0xff]  ;;  %s403_s8 = sshll.u32 %s230_s7, 3  ;;  %s311_s23 = scalar_lea.sflag [#allocation4], %s230_s7 }
  0x1a   : > { %s404_s13 = sshll.u32 %s234_s12, 3  ;;  %290 = vmatpush.msra.mxu1 %v283_v4  ;;  %v275_v12 = vld [vmem:[#allocation2 + $0x30] sm:$0xff]  ;;  %v274_v13 = vld [vmem:[#allocation2 + $0x28] sm:$0xff]  ;;  %v273_v14 = vld [vmem:[#allocation2 + $0x20] sm:$0xff]  ;;  %s321_s12 = scalar_lea.hbm %s707_s5, %s407_s9 }
  0x1b   : > { %s236_s16 = scalar_lea.vmem %s702_s0, %s404_s13  ;;  %v272_v15 = vld [vmem:[#allocation2 + $0x18] sm:$0xff]  ;;  %v271_v16 = vld [vmem:[#allocation2 + $0x10] sm:$0xff]  ;;  %v270_v17 = vld [vmem:[#allocation2 + $0x8] sm:$0xff]  ;;  %s232_s15 = scalar_lea.vmem [#allocation5], %s403_s8 }
  0x1c   : > { %v237_v2 = vld [vmem:[%s236_s16] sm:$0xff]  ;;  %291 = vmatpush.msra.mxu1 %v282_v5  ;;  %s323_s16 = sshll.u32 %s232_s15, 4  ;;  %s325_s17 = sshll.u32 %s321_s12, 4  ;;  %s324_s16 = int_to_ptr.vmem [resolvable:$true] %s323_s16  ;;  %s326_s17 = int_to_ptr.hbm [resolvable:$true] %s325_s17 }
  0x1d   : > { %405 = vmatmul.msk.f32.vlgmr.msra.gmra.mxu0 %vm244_vm0, %v237_v2  ;;  %v269_v18 = vld [vmem:[#allocation2] sm:$0xff]  ;;  %s508_s25 = sshra.s32 %s326_s17, 4  ;;  %s514_s6 = scalar_lea.hbm %s707_s5, 24  ;;  %s509_s25 = int_to_ptr.hbm [resolvable:$true] %s508_s25 }
  0x1e   : > { %292 = vmatpush.msra.mxu1 %v281_v6  ;;  %v462_v19 = vld [vmem:[%s704_s2] ss:$0 sm:$0xff]  ;;  %s510_s22 = scalar_lea.hbm %s509_s25, 8  ;;  %p515_p3 = scmp.lt.s32.totalorder %s509_s25, %s707_s5 }
  0x1f   : > { %v463_v23 = vld [vmem:[%s706_s4] ss:$0 sm:$0xff]  ;;  %p511_p0 = scmp.ne.s32.totalorder %s509_s25, %s510_s22  ;;  %p516_p4 = scmp.lt.s32.totalorder %s514_s6, %s510_s22 }
  0x20   : > { %293 = vmatpush.msra.mxu1 %v280_v7 }
  0x21   : > { %p512_p1 = pnand %p511_p0, %p633_p5  ;;  %p517_p7 = por %p516_p4, %p515_p3 }
  0x22   : > { %294 = vmatpush.msra.mxu1 %v279_v8 }
  0x23   : > { %p513_p2 = pneg %p512_p1 }
  0x24   : > { %295 = vmatpush.msra.mxu1 %v278_v9 }
  0x25   : > { %p518_p8 = pnand %p517_p7, %p513_p2 }
  0x26   : > { %296 = vmatpush.msra.mxu1 %v277_v10 }
  0x28   : > { %297 = vmatpush.msra.mxu1 %v276_v11 }
  0x2a   : > { %298 = vmatpush.msra.mxu1 %v275_v12 }
  0x2c   : > { %299 = vmatpush.msra.mxu1 %v274_v13 }
  0x2e   : > { %300 = vmatpush.msra.mxu1 %v273_v14 }
  0x30   : > { %301 = vmatpush.msra.mxu1 %v272_v15 }
  0x32   : > { %302 = vmatpush.msra.mxu1 %v271_v16 }
  0x34   : > { %303 = vmatpush.msra.mxu1 %v270_v17 }
  0x36   : > { %304 = vmatpush.msra.mxu1 %v269_v18 }
  0x9a   : > { %v265_v20 = vpop.f32.mrf.mxu0 }
  0x9b   : > { %v266_v21 = vadd.f32 %v462_v19, %v265_v20 }
  0x9d   : > { %v268_v22 = vmax.f32 %v266_v21, 0.0 }
  0x9f   : > { %305 = vmatmul.f32.vlgmr.msra.gmra.mxu1 %v268_v22 }
 0x11c   : > { %v306_v24 = vpop.f32.mrf.mxu1 }
 0x11d   : > { %v307_v25 = vadd.f32 %v463_v23, %v306_v24 }
 0x11f   : > { %309 = vst [vmem:[%s232_s15] sm:$0xff] %v307_v25 }
 0x120   : > { %521 = shalt.err (!%p518_p8)
}
 0x121   : > { %414 = dma.vmem_to_hbm [thread:$0]  (%p633_p5), %s324_s16, 128, %s326_s17, %s311_s23  }
 0x122 PF: > { %p426_p9 = scmp.ge.s32.totalorder %s560_s21, 2  ;;  %s337_s7 = sand.u32 1, %s548_s18  }
 0x123   : > { %s338_s10 = scalar_lea.sflag [#allocation4], %s337_s7 }
 0x124   : > { %p421_p10 = pnand %p426_p9, %p637_p6 }
 0x126   : > { %p422_p11 = pneg %p421_p10 }
 0x128   : > { %543 = dma.done.wait (%p422_p11), %s338_s10, 128  }
 0x129   : > { %545 = vsyncadd (%p422_p11), %s338_s10, 4294967168  ;;  %p16_p12 = scmp.ge.s32.totalorder %s620_s24, 5   ;;  %s710_s18 = smov %s552_s19 }
 0x12a   : > { %s711_s19 = smov %s556_s20  ;;  %s712_s20 = smov %s631_s27 }
 0x12b   : > { %s713_s21 = smov %s620_s24  ;;  %18 = sbr.rel (!%p16_p12) target bundleno = 4 (0x4), region = 80 }
 0x130   :  { %344 = vsyncpa [#allocation3], 1 }
 0x131   :  { %346 = vsyncpa [#allocation3 + $0x1], 1 }
 0x132   :  { %347 = vsyncpa [#allocation4], 1 }
 0x133   :  { %349 = vsyncpa [#allocation4 + $0x1], 1 }

</bundles_post_ra>
